<compile_context>
chip_gen: v6e
topology: v6e:2x2x1
jax: 0.10.0
libtpu: 0.0.40
codegen_flags: <defaults>
</compile_context>

<pallas_src>
import jax
import jax.numpy as jnp
from jax.experimental import pallas as pl
from jax.experimental.pallas import tpu as pltpu


def _round_up(x, m):
    return ((x + m - 1) // m) * m


def _pick_tile(dim, candidates):
    for c in candidates:
        if dim % c == 0:
            return c
    return dim


def _fused_matmul_tanh_kernel(xh_ref, w_ref, b_ref, o_ref, acc_ref):
    # xh_ref: [tb, tk]   slice of [x | h]            (zero padded)
    # w_ref:  [tk, tn]   slice of [W_in^T ; W_h^T]   (zero padded)
    # b_ref:  [1,  tn]   pre-summed bias b_in + b_h  (zero padded)
    # o_ref:  [tb, tn]   output tile (resident across the K axis)
    # acc_ref:[tb, tn]   f32 accumulator scratch
    k = pl.program_id(2)

    @pl.when(k == 0)
    def _():
        acc_ref[...] = jnp.zeros_like(acc_ref)

    acc_ref[...] += jnp.dot(xh_ref[...], w_ref[...],
                            preferred_element_type=jnp.float32)

    @pl.when(k == pl.num_programs(2) - 1)
    def _():
        o_ref[...] = jnp.tanh(acc_ref[...] + b_ref[...]).astype(o_ref.dtype)


def make_rnn_cell(w_in, b_in, w_h, b_h):
    """One-time parameter preparation; returns a jitted `cell(x, hidden=None)`.

    w_in: [H, I]  (PyTorch nn.Linear weight layout)
    b_in: [H]
    w_h:  [H, H]
    b_h:  [H]
    """
    H, I = w_in.shape
    assert w_h.shape == (H, H) and b_in.shape == (H,) and b_h.shape == (H,)

    i_pad = _round_up(I, 128)    # input features on the contraction axis
    hk_pad = _round_up(H, 128)   # hidden features on the contraction axis
    hn_pad = _round_up(H, 128)   # hidden features on the output (lane) axis

    # --- one-time weight prep (never on the per-step path) -------------------
    w_in_t = jnp.zeros((i_pad, hn_pad), w_in.dtype).at[:I, :H].set(w_in.T)
    w_h_t = jnp.zeros((hk_pad, hn_pad), w_h.dtype).at[:H, :H].set(w_h.T)
    w_cat = jnp.concatenate([w_in_t, w_h_t], axis=0)     # [(I_pad+H_pad), H_pad]
    bias = jnp.zeros((1, hn_pad), b_in.dtype).at[0, :H].set(b_in + b_h)

    # Tile sizes: largest of 512/256/128 dividing the (128-multiple) dims.
    tn = _pick_tile(hn_pad, (512, 256, 128))
    # tk must divide both i_pad (hidden=None path) and i_pad + hk_pad.
    tk = next(c for c in (512, 256, 128) if i_pad % c == 0 and hk_pad % c == 0)

    def _call(xh, k_total):
        b_pad = xh.shape[0]
        tb = _pick_tile(b_pad, (256, 128, 64, 32, 16, 8))
        grid = (b_pad // tb, hn_pad // tn, k_total // tk)
        return pl.pallas_call(
            _fused_matmul_tanh_kernel,
            out_shape=jax.ShapeDtypeStruct((b_pad, hn_pad), xh.dtype),
            grid_spec=pltpu.PrefetchScalarGridSpec(
                num_scalar_prefetch=0,
                grid=grid,
                in_specs=[
                    pl.BlockSpec((tb, tk), lambda i, j, k: (i, k)),
                    pl.BlockSpec((tk, tn), lambda i, j, k: (k, j)),
                    pl.BlockSpec((1, tn), lambda i, j, k: (0, j)),
                ],
                out_specs=pl.BlockSpec((tb, tn), lambda i, j, k: (i, j)),
                scratch_shapes=[pltpu.VMEM((tb, tn), jnp.float32)],
            ),
            compiler_params=pltpu.CompilerParams(
                dimension_semantics=("parallel", "parallel", "arbitrary")),
        )(xh, w_cat, bias)

    @jax.jit
    def cell(x, hidden=None):
        assert x.shape[-1] == I, "input feature size mismatch"
        B = x.shape[0]
        b_pad = _round_up(B, 8)
        if hidden is None:
            # Skip the recurrent matmul: only the W_in rows of the fused
            # weight are visited by the K grid, so W_h is never DMA'd.
            xp = jnp.zeros((b_pad, i_pad), x.dtype).at[:B, :I].set(x)
            out = _call(xp, i_pad)
        else:
            xh = jnp.zeros((b_pad, i_pad + hk_pad), x.dtype)
            xh = xh.at[:B, :I].set(x).at[:B, i_pad:i_pad + H].set(hidden)
            out = _call(xh, i_pad + hk_pad)
        return out[:B, :H]

    return cell


if __name__ == "__main__":
    # Small, deterministic setup matching the module: B x input_size -> B x hidden_size.
    B, INPUT_SIZE, HIDDEN_SIZE = 8, 16, 32
    key = jax.random.PRNGKey(0)
    k_x, k_h, k_wi, k_bi, k_wh, k_bh = jax.random.split(key, 6)

    # PyTorch-like uniform init: U(-1/sqrt(fan_in), 1/sqrt(fan_in)).
    bound_in = 1.0 / (INPUT_SIZE ** 0.5)
    bound_h = 1.0 / (HIDDEN_SIZE ** 0.5)
    w_in = jax.random.uniform(k_wi, (HIDDEN_SIZE, INPUT_SIZE), jnp.float32,
                              -bound_in, bound_in)
    b_in = jax.random.uniform(k_bi, (HIDDEN_SIZE,), jnp.float32, -bound_in, bound_in)
    w_h = jax.random.uniform(k_wh, (HIDDEN_SIZE, HIDDEN_SIZE), jnp.float32,
                             -bound_h, bound_h)
    b_h = jax.random.uniform(k_bh, (HIDDEN_SIZE,), jnp.float32, -bound_h, bound_h)

    x = jax.random.normal(k_x, (B, INPUT_SIZE), jnp.float32)
    hidden = jax.random.normal(k_h, (B, HIDDEN_SIZE), jnp.float32)

    cell = make_rnn_cell(w_in, b_in, w_h, b_h)

    # Case 1: explicit hidden.
    out = jax.block_until_ready(cell(x, hidden))
    # Case 2: hidden=None (zeros), as in the PyTorch module.
    out0 = jax.block_until_ready(cell(x))

    # Pure-JAX reference check.
    ref = jnp.tanh(x @ w_in.T + b_in + hidden @ w_h.T + b_h)
    ref0 = jnp.tanh(x @ w_in.T + b_in + b_h)   # zero hidden -> only biases from W_h path
    assert out.shape == (B, HIDDEN_SIZE)
    assert out0.shape == (B, HIDDEN_SIZE)
    assert jnp.allclose(out, ref, atol=1e-5, rtol=1e-5)
    assert jnp.allclose(out0, ref0, atol=1e-5, rtol=1e-5)

    print("KERNEL_OK")
</pallas_src>

<mosaic_0001>
module attributes {stable_mosaic.version = 11 : i64} {
  func.func @_fused_matmul_tanh_kernel(%arg0: i32, %arg1: i32, %arg2: i32, %arg3: memref<8x128xf32, #tpu.memory_space<vmem>>, %arg4: memref<128x128xf32, #tpu.memory_space<vmem>>, %arg5: memref<1x128xf32, #tpu.memory_space<vmem>>, %arg6: memref<8x128xf32, #tpu.memory_space<vmem>>, %arg7: memref<8x128xf32, #tpu.memory_space<vmem>>) attributes {dimension_semantics = [#tpu.dimension_semantics<parallel>, #tpu.dimension_semantics<parallel>, #tpu.dimension_semantics<arbitrary>], iteration_bounds = array<i64: 1, 1, 2>, scalar_prefetch = 0 : i64, scratch_operands = 1 : i64, tpu.core_type = #tpu.core_type<tc>, window_params = [{transform_indices = @transform_0, window_bounds = array<i64: 8, 128>}, {transform_indices = @transform_1, window_bounds = array<i64: 128, 128>}, {transform_indices = @transform_2, window_bounds = array<i64: 1, 128>}, {transform_indices = @transform_3, window_bounds = array<i64: 8, 128>}]} {
    %c0_i32 = arith.constant 0 : i32
    %0 = arith.cmpi eq, %arg2, %c0_i32 : i32
    %1 = arith.extui %0 : i1 to i32
    %c0_i32_0 = arith.constant 0 : i32
    %2 = arith.cmpi ne, %1, %c0_i32_0 : i32
    scf.if %2 {
      %cst_9 = arith.constant 0.000000e+00 : f32
      %12 = vector.broadcast %cst_9 : f32 to vector<8x128xf32>
      %c0_10 = arith.constant 0 : index
      %c0_11 = arith.constant 0 : index
      %13 = vector.load %arg7[%c0_10, %c0_11] : memref<8x128xf32, #tpu.memory_space<vmem>>, vector<8x128xf32>
      tpu.vector_store %arg7[%c0_10, %c0_11], %12 {strides = array<i32>} : memref<8x128xf32, #tpu.memory_space<vmem>>, vector<8x128xf32>,
    } else {
    }
    %c0 = arith.constant 0 : index
    %c0_1 = arith.constant 0 : index
    %3 = vector.load %arg7[%c0, %c0_1] : memref<8x128xf32, #tpu.memory_space<vmem>>, vector<8x128xf32>
    %c0_2 = arith.constant 0 : index
    %c0_3 = arith.constant 0 : index
    %4 = vector.load %arg3[%c0_2, %c0_3] : memref<8x128xf32, #tpu.memory_space<vmem>>, vector<8x128xf32>
    %c0_4 = arith.constant 0 : index
    %c0_5 = arith.constant 0 : index
    %5 = vector.load %arg4[%c0_4, %c0_5] : memref<128x128xf32, #tpu.memory_space<vmem>>, vector<128x128xf32>
    %cst = arith.constant dense<0.000000e+00> : vector<8x128xf32>
    %6 = tpu.matmul %4, %5, %cst {dimension_numbers = #tpu.dot_dimension_numbers<[1], [0], [0], [1], [0, 0, 1, 1], [], []>} : vector<8x128xf32>, vector<128x128xf32>, vector<8x128xf32> -> vector<8x128xf32>
    %7 = arith.addf %3, %6 : vector<8x128xf32>
    %c0_6 = arith.constant 0 : index
    %c0_7 = arith.constant 0 : index
    %8 = vector.load %arg7[%c0_6, %c0_7] : memref<8x128xf32, #tpu.memory_space<vmem>>, vector<8x128xf32>
    tpu.vector_store %arg7[%c0_6, %c0_7], %7 {strides = array<i32>} : memref<8x128xf32, #tpu.memory_space<vmem>>, vector<8x128xf32>,
    %c1_i32 = arith.constant 1 : i32
    %9 = arith.cmpi eq, %arg2, %c1_i32 : i32
    %10 = arith.extui %9 : i1 to i32
    %c0_i32_8 = arith.constant 0 : i32
    %11 = arith.cmpi ne, %10, %c0_i32_8 : i32
    scf.if %11 {
      %c0_9 = arith.constant 0 : index
      %c0_10 = arith.constant 0 : index
      %12 = vector.load %arg7[%c0_9, %c0_10] : memref<8x128xf32, #tpu.memory_space<vmem>>, vector<8x128xf32>
      %c0_11 = arith.constant 0 : index
      %c0_12 = arith.constant 0 : index
      %13 = vector.load %arg5[%c0_11, %c0_12] : memref<1x128xf32, #tpu.memory_space<vmem>>, vector<1x128xf32>
      %14 = vector.broadcast %13 : vector<1x128xf32> to vector<8x128xf32>
      %15 = arith.addf %12, %14 : vector<8x128xf32>
      %16 = math.tanh %15 : vector<8x128xf32>
      %c0_13 = arith.constant 0 : index
      %c0_14 = arith.constant 0 : index
      %17 = vector.load %arg6[%c0_13, %c0_14] : memref<8x128xf32, #tpu.memory_space<vmem>>, vector<8x128xf32>
      tpu.vector_store %arg6[%c0_13, %c0_14], %16 {strides = array<i32>} : memref<8x128xf32, #tpu.memory_space<vmem>>, vector<8x128xf32>,
    } else {
    }
    return
  }
  func.func @transform_0(%arg0: i32, %arg1: i32, %arg2: i32) -> (i32, i32) {
    %c0_i32 = arith.constant 0 : i32
    return %arg0, %arg2 : i32, i32
  }
  func.func @transform_1(%arg0: i32, %arg1: i32, %arg2: i32) -> (i32, i32) {
    %c0_i32 = arith.constant 0 : i32
    return %arg2, %arg1 : i32, i32
  }
  func.func @transform_2(%arg0: i32, %arg1: i32, %arg2: i32) -> (i32, i32) {
    %c0_i32 = arith.constant 0 : i32
    %c0_i32_0 = arith.constant 0 : i32
    return %c0_i32, %arg1 : i32, i32
  }
  func.func @transform_3(%arg0: i32, %arg1: i32, %arg2: i32) -> (i32, i32) {
    %c0_i32 = arith.constant 0 : i32
    return %arg0, %arg1 : i32, i32
  }
}

</mosaic_0001>

<bundles_post_ra>
// kernel: cell.1
= control target key start
LH: loop header
LB: loop body
LE: loop exit
PB: predicated region body
PF: predicated region fallthrough
CT: control target
= control target key end

     0   :  { %8 = vsyncpa [#allocation4], 0  ;;  %s884_s0 = inlined_call_operand.vmem [shape: f32[8,256], index: 0, kind: input, shape index: {}]   ;;  %s885_s1 = inlined_call_operand.hbm [shape: f32[256,128], index: 1, kind: input, shape index: {}]   ;;  %s886_s2 = inlined_call_operand.vmem [shape: f32[1,128], index: 2, kind: input, shape index: {}]   ;;  %s887_s3 = inlined_call_operand.hbm [shape: f32[8,128], index: 3, kind: output, shape index: {}]  }
   0x1   :  { %10 = vsyncpa [#allocation4 + $0x1], 0 }
   0x2   :  { %11 = vsyncpa [#allocation5], 0  ;;  %s743_s12 = smov 0   ;;  %s745_s13 = smov 0  }
   0x3   :  { %s747_s14 = smov 0   ;;  %s749_s15 = smov 0  }
   0x4   :  { %s751_s16 = smov 0   ;;  %s753_s17 = smov 0  }
   0x5 LB: > { %s469_s18 = sadd.s32 4294967295, %s714_s17   ;;  %s29_s19 = sadd.s32 1, %s710_s16  ;;  %s714_s17 = sphi %s753_s17, %s17_s17   ;;  %s710_s16 = sphi %s751_s16, %s896_s16   ;;  %s706_s15 = sphi %s749_s15, %s895_s15   ;;  %s702_s14 = sphi %s747_s14, %s894_s14   ;;  %s698_s13 = sphi %s745_s13, %s893_s13   ;;  %s694_s12 = sphi %s743_s12, %s892_s12  }
   0x6   : > { %p30_p0 = scmp.ge.s32.totalorder %s29_s19, 2  ;;  %s73_s20 = sadd.s32 1, %s702_s14 }
   0x7   : > { %p80_p1 = scmp.ne.s32.totalorder %s702_s14, %s698_s13  ;;  %p81_p2 = scmp.eq.s32.totalorder %s714_s17, 0 }
   0x8   : > { %s898_s19 = smov (%p30_p0, %s29_s19), 0  ;;  %p86_p4 = scmp.ne.s32.totalorder %s698_s13, %s694_s12 }
   0x9   : > { %p779_p3 = por %p81_p2, %p80_p1  ;;  %s68_s22 = ssub.s32 %s710_s16, %s898_s19 }
   0xa   : > { %p87_p5 = scmp.eq.s32.totalorder %s469_s18, 0  ;;  %p71_p6 = scmp.eq.s32.totalorder %s68_s22, 0 }
   0xb   : > { %p549_p8 = scmp.lt.s32.totalorder %s714_s17, 2  ;;  %s181_s25 = sand.u32 1, %s702_s14  }
   0xc   : > { %p788_p7 = por %p87_p5, %p86_p4  ;;  %s486_s26 = sshll.u32 %s710_s16, 11 }
   0xd   : > { %s794_s24 = scalar_select %p71_p6, %s702_s14, %s73_s20  }
   0xe   : > { %s473_s27 = sshll.u32 %s181_s25, 7  ;;  %s192_s30 = scalar_lea.hbm %s885_s1, %s486_s26 }
   0xf   : > { %s185_s4 = scalar_lea.vmem [#allocation3], %s473_s27  ;;  %p803_p9 = pnand %p549_p8, %p779_p3 }
  0x10   : > { %s193_s5 = sshll.u32 %s185_s4, 4  ;;  %s182_s7 = scalar_lea.sflag [#allocation4], %s181_s25  ;;  %s194_s5 = int_to_ptr.vmem [resolvable:$true] %s193_s5 }
  0x11   : > { %p610_p10 = pneg %p803_p9  ;;  %s621_s8 = scalar_lea.vmem %s194_s5, 2048 }
  0x12   : > { %p622_p11 = scmp.ne.s32.totalorder %s194_s5, %s621_s8  ;;  %s716_s9 = smov [#allocation3]  }
  0x13   : > { %s626_s10 = sshll.u32 %s716_s9, 4  ;;  %s627_s10 = int_to_ptr.vmem [resolvable:$false] %s626_s10 }
  0x14   : > { %p624_p12 = pnand %p622_p11, %p610_p10  ;;  %s628_s11 = scalar_lea.vmem %s627_s10, 4096 }
  0x15   : > { %p629_p0 = scmp.lt.s32.totalorder %s194_s5, %s627_s10  ;;  %p630_p1 = scmp.lt.s32.totalorder %s628_s11, %s621_s8 }
  0x16   : > { %p625_p13 = pneg %p624_p12 }
  0x17   : > { %p631_p2 = por %p630_p1, %p629_p0 }
  0x19   : > { %p632_p3 = pnand %p631_p2, %p625_p13 }
  0x1b   : > { %635 = shalt.err (!%p632_p3)
}
  0x1c   : > { %s717_s12 = smov 128   ;;  %s718_s20 = smov 8  }
  0x1d   : > { %548 = dma.hbm_to_vmem [thread:$0]  (!%p803_p9), %s192_s30, 2048, %s194_s5, %s182_s7, %s717_s12, %s717_s12, %s718_s20  }
  0x1e   : > { %p476_p4 = scmp.ge.s32.totalorder %s714_s17, 1  ;;  %p201_p5 = scmp.lt.s32.totalorder %s714_s17, 3 }
  0x20   : > { %p202_p6 = pnand %p476_p4, %p201_p5 }
  0x21   : > { %s207_s21 = sand.u32 (!%p202_p6), 1, %s698_s13  }
  0x22   : > { %205 = sbr.rel (%p202_p6) target bundleno = 318 (0x13e), region = 32  ;;  %s477_s22 = sshll.u32 (!%p202_p6), %s207_s21, 7 }
  0x23   : > { %s208_s25 = scalar_lea.sflag (!%p202_p6), [#allocation4], %s207_s21  ;;  %s814_s26 = scalar_lea.vmem (!%p202_p6), [#allocation3], %s477_s22 }
  0x27   : > { %685 = dma.done.wait (%p788_p7), %s208_s25, 2048  }
  0x28   : > { %687 = vsyncadd (%p788_p7), %s208_s25, 4294965248  ;;  %p242_p8 = scmp.lt.s32.totalorder %s706_s15, 1  ;;  %p479_p9 = scmp.ne.s32.totalorder %s706_s15, 0 }
  0x2a   : > { %s243_s27 = scalar_select %p242_p8, %s706_s15, 1 }
  0x2b   : > { %255 = sbr.rel (%p479_p9) target bundleno = 50 (0x32), region = 40 }
  0x2c   : > { %s478_s28 = sshll.u32 %s243_s27, 3 }
  0x2d   : > { %s825_s4 = scalar_lea.vmem %s884_s0, %s478_s28 }
  0x30   : > { %v719_v0 = vmov 0.0  }
  0x31   : > { %256 = vst [vmem:[#allocation2] sm:$0xff] %v719_v0 }
  0x32 PF: > { %v274_v1 = vld [vmem:[%s814_s26 + $0x78] sm:$0xff]  ;;  %v720_v2 = vmov 0.0   ;;  %v273_v3 = vld [vmem:[%s814_s26 + $0x70] sm:$0xff]  ;;  %vm721_vm0 = vmmov 0   ;;  %v272_v4 = vld [vmem:[%s814_s26 + $0x68] sm:$0xff]  ;;  %p480_p7 = scmp.ne.s32.totalorder %s706_s15, 1 }
  0x33   : > { %504 = vmatprep.subr.mxu0 %v720_v2  ;;  %536 = vmatprep.mubr.msk.f32.mxu0 %vm721_vm0, %v720_v2  ;;  %v271_v5 = vld [vmem:[%s814_s26 + $0x60] sm:$0xff]  ;;  %v270_v6 = vld [vmem:[%s814_s26 + $0x58] sm:$0xff]  ;;  %v269_v7 = vld [vmem:[%s814_s26 + $0x50] sm:$0xff] }
  0x34   : > { %505 = vmatpush3.msra.mxu0 %v274_v1  ;;  %v268_v8 = vld [vmem:[%s814_s26 + $0x48] sm:$0xff]  ;;  %v267_v9 = vld [vmem:[%s814_s26 + $0x40] sm:$0xff]  ;;  %v266_v10 = vld [vmem:[%s814_s26 + $0x38] sm:$0xff] }
  0x35   : > { %506 = vmatprep.subr.mxu0 %v720_v2  ;;  %v265_v11 = vld [vmem:[%s814_s26 + $0x30] sm:$0xff]  ;;  %v264_v12 = vld [vmem:[%s814_s26 + $0x28] sm:$0xff]  ;;  %v263_v13 = vld [vmem:[%s814_s26 + $0x20] sm:$0xff] }
  0x36   : > { %507 = vmatpush3.msra.mxu0 %v273_v3  ;;  %v262_v14 = vld [vmem:[%s814_s26 + $0x18] sm:$0xff]  ;;  %v261_v15 = vld [vmem:[%s814_s26 + $0x10] sm:$0xff]  ;;  %v260_v16 = vld [vmem:[%s814_s26 + $0x8] sm:$0xff] }
  0x37   : > { %508 = vmatprep.subr.mxu0 %v720_v2  ;;  %v259_v17 = vld [vmem:[%s814_s26] sm:$0xff]  ;;  %v258_v18 = vld [vmem:[%s825_s4] sm:$0xff] }
  0x38   : > { %509 = vmatpush3.msra.mxu0 %v272_v4  ;;  %v257_v19 = vld [vmem:[#allocation2] sm:$0xff] }
  0x39   : > { %510 = vmatprep.subr.mxu0 %v720_v2 }
  0x3a   : > { %511 = vmatpush3.msra.mxu0 %v271_v5 }
  0x3b   : > { %512 = vmatprep.subr.mxu0 %v720_v2 }
  0x3c   : > { %513 = vmatpush3.msra.mxu0 %v270_v6 }
  0x3d   : > { %514 = vmatprep.subr.mxu0 %v720_v2 }
  0x3e   : > { %515 = vmatpush3.msra.mxu0 %v269_v7 }
  0x3f   : > { %516 = vmatprep.subr.mxu0 %v720_v2 }
  0x40   : > { %517 = vmatpush3.msra.mxu0 %v268_v8 }
  0x41   : > { %518 = vmatprep.subr.mxu0 %v720_v2 }
  0x42   : > { %519 = vmatpush3.msra.mxu0 %v267_v9 }
  0x43   : > { %520 = vmatprep.subr.mxu0 %v720_v2 }
  0x44   : > { %521 = vmatpush3.msra.mxu0 %v266_v10 }
  0x45   : > { %522 = vmatprep.subr.mxu0 %v720_v2 }
  0x46   : > { %523 = vmatpush3.msra.mxu0 %v265_v11 }
  0x47   : > { %524 = vmatprep.subr.mxu0 %v720_v2 }
  0x48   : > { %525 = vmatpush3.msra.mxu0 %v264_v12 }
  0x49   : > { %526 = vmatprep.subr.mxu0 %v720_v2 }
  0x4a   : > { %527 = vmatpush3.msra.mxu0 %v263_v13 }
  0x4b   : > { %528 = vmatprep.subr.mxu0 %v720_v2 }
  0x4c   : > { %529 = vmatpush3.msra.mxu0 %v262_v14 }
  0x4d   : > { %530 = vmatprep.subr.mxu0 %v720_v2 }
  0x4e   : > { %531 = vmatpush3.msra.mxu0 %v261_v15 }
  0x4f   : > { %532 = vmatprep.subr.mxu0 %v720_v2 }
  0x50   : > { %533 = vmatpush3.msra.mxu0 %v260_v16 }
  0x51   : > { %534 = vmatprep.subr.mxu0 %v720_v2 }
  0x52   : > { %535 = vmatpush3.msra.mxu0 %v259_v17 }
  0x53   : > { %537 = vmatmul.mubr.f32.vlgmr.msra.gmra.mxu0 %v258_v18 }
 0x112   : > { %350 = sbr.rel (%p480_p7) target bundleno = 303 (0x12f), region = 44 }
 0x113   : > { %v341_v20 = vpop.f32.mrf.mxu0 }
 0x114   : > { %v345_v21 = vadd.f32 %v341_v20, %v257_v19 }
 0x115   : > { %v538_v22 = vpop.f32.mrf.mxu0 }
 0x116   : > { %346 = vst [vmem:[#allocation2] sm:$0xff] %v345_v21 }
 0x117   : > { %v481_v24 = vld [vmem:[%s886_s2] ss:$0 sm:$0xff] }
 0x11d   : > { %v351_v23 = vld [vmem:[#allocation2] sm:$0xff] }
 0x11e   : > { %v359_v25 = vadd.f32 %v481_v24, %v351_v23 }
 0x120   : > { %606 = vtanh.f32 %v359_v25 }
 0x12d   : > { %v607_v26 = vpop.eup %606 }
 0x12e   : > { %361 = vst [vmem:[#allocation6] sm:$0xff] %v607_v26 }
 0x12f PF: > { %p851_p10 = scmp.eq.s32.totalorder %s469_s18, 1  ;;  %s722_s7 = smov [#allocation6]  }
 0x130   : > { %s372_s15 = sshll.u32 %s722_s7, 4  ;;  %s373_s15 = int_to_ptr.vmem [resolvable:$true] %s372_s15 }
 0x131   : > { %s636_s8 = scalar_lea.vmem %s373_s15, 128  ;;  %p643_p0 = scmp.lt.s32.totalorder %s373_s15, %s373_s15 }
 0x132   : > { %p637_p11 = scmp.ne.s32.totalorder %s373_s15, %s636_s8  ;;  %p644_p1 = scmp.lt.s32.totalorder %s636_s8, %s636_s8 }
 0x134   : > { %p638_p12 = pnand %p637_p11, %p851_p10  ;;  %p645_p2 = por %p644_p1, %p643_p0 }
 0x136   : > { %p639_p13 = pneg %p638_p12 }
 0x138   : > { %p646_p3 = pnand %p645_p2, %p639_p13 }
 0x13a   : > { %649 = shalt.err (!%p646_p3)
}
 0x13b   : > { %542 = dma.vmem_to_hbm [thread:$0]  (%p851_p10), %s373_s15, 128, %s887_s3, [#allocation5]  }
 0x13c   : > { %689 = dma.done.wait (%p851_p10), [#allocation5], 128  }
 0x13d   : > { %691 = vsyncadd (%p851_p10), [#allocation5], 4294967168 }
 0x13e PF: > { %s17_s17 = sadd.s32 1, %s714_s17   ;;  %s892_s12 = smov %s698_s13 }
 0x13f   : > { %p14_p4 = scmp.ge.s32.totalorder %s17_s17, 4   ;;  %s893_s13 = smov %s702_s14 }
 0x140   : > { %s894_s14 = smov %s794_s24  ;;  %s895_s15 = smov %s710_s16 }
 0x141   : > { %s896_s16 = smov %s898_s19  ;;  %16 = sbr.rel (!%p14_p4) target bundleno = 5 (0x5), region = 84 }
 0x146   :  { %385 = vsyncpa [#allocation4], 1 }
 0x147   :  { %387 = vsyncpa [#allocation4 + $0x1], 1 }
 0x148   :  { %388 = vsyncpa [#allocation5], 1 }
 0x149   :  { %390 = vsyncpa [#allocation5 + $0x1], 1 }

</bundles_post_ra>
